<compile_context>
chip_gen: v7x
topology: tpu7x:2x2x1
jax: 0.10.0
libtpu: 0.0.40
codegen_flags: <defaults>
</compile_context>

<pallas_src>
import numpy as np

import jax
import jax.numpy as jnp
from jax.experimental import pallas as pl
from jax.experimental.pallas import tpu as pltpu


# --------------------------- parameter construction ---------------------------
def make_cba_params(key, cin, cout, eps=1e-5):
    """Deterministic synthetic params for one CBAModule (conv3x3 + BN)."""
    k1, k2, k3, k4, k5 = jax.random.split(key, 5)
    w_oihw = jax.random.normal(k1, (cout, cin, 3, 3), jnp.float32) * 0.1
    gamma = 1.0 + 0.1 * jax.random.normal(k2, (cout,), jnp.float32)
    beta = 0.1 * jax.random.normal(k3, (cout,), jnp.float32)
    mean = 0.1 * jax.random.normal(k4, (cout,), jnp.float32)
    var = jax.random.uniform(k5, (cout,), jnp.float32, minval=0.5, maxval=1.5)
    scale = gamma / jnp.sqrt(var + eps)
    shift = beta - mean * scale
    return dict(w_oihw=w_oihw, scale=scale, shift=shift)


def detect_module_params(key, in_channels):
    ks = jax.random.split(key, 5)
    bw = in_channels // 4
    return dict(
        upconv=make_cba_params(ks[0], in_channels, in_channels // 2),
        ctx_in=make_cba_params(ks[1], in_channels, bw),
        ctx_up=make_cba_params(ks[2], bw, bw),
        ctx_down=make_cba_params(ks[3], bw, bw),
        ctx_down2=make_cba_params(ks[4], bw, bw),
    )


def _fold_cba_kx(p):
    """Fold BN scale into conv weights; reshape for per-kx-column matmuls.

    Returns (wk, shift):
      wk[kx] : (Cout, 3*Cin) bf16, K ordered [ky=0 | ky=1 | ky=2] (matches the
               in-kernel patch concat), BN scale folded in.
      shift  : (Cout, 1) f32, added after the matmul.
    """
    w = p["w_oihw"] * p["scale"][:, None, None, None]          # (Co, Ci, 3, 3)
    cout, cin = w.shape[0], w.shape[1]
    wk = jnp.transpose(w, (3, 0, 2, 1)).reshape(3, cout, 3 * cin)  # (kx,Co,ky*Ci)
    return wk.astype(jnp.bfloat16), p["shift"].reshape(cout, 1).astype(jnp.float32)


def prepare_kernel_params(params):
    """Kernel-ready weights: convs sharing an input are concatenated along Cout."""
    w_up, b_up = _fold_cba_kx(params["upconv"])
    w_in, b_in = _fold_cba_kx(params["ctx_in"])
    w_cu, b_cu = _fold_cba_kx(params["ctx_up"])
    w_cd, b_cd = _fold_cba_kx(params["ctx_down"])
    w_d2, b_d2 = _fold_cba_kx(params["ctx_down2"])
    return dict(
        wx=jnp.concatenate([w_up, w_in], axis=1),   # (3, C/2 + C/4, 3*C)   bf16
        bx=jnp.concatenate([b_up, b_in], axis=0),   # (C/2 + C/4, 1)        f32
        wt=jnp.concatenate([w_cu, w_cd], axis=1),   # (3, 2*C/4, 3*C/4)     bf16
        bt=jnp.concatenate([b_cu, b_cd], axis=0),   # (2*C/4, 1)            f32
        wd=w_d2,                                    # (3, C/4, 3*C/4)       bf16
        bd=b_d2,                                    # (C/4, 1)              f32
    )


def _whole_array_spec(shape):
    """BlockSpec for an array that is identical for every grid step."""
    return pl.BlockSpec(shape, lambda n: (0,) * len(shape))


# ------------------------------- fused forward --------------------------------
@jax.jit
def detect_module_forward(x_nchw, kp):
    """DetectModule.forward; input and output are NCHW to match PyTorch."""
    N, C, H, W = x_nchw.shape
    assert C % 4 == 0, "in_channels must be divisible by 4"
    HW = H * W
    assert HW % 128 == 0, "kernel assumes H*W is a multiple of the 128-lane width"
    c_half, bw = C // 2, C // 4
    c_out = c_half + 2 * bw

    # Zero-guard width (lanes) on each side of the staged image; must cover the
    # largest flat tap offset W+1 and stay 128-aligned for lane-friendly stores.
    G = ((W + 1 + 127) // 128) * 128
    assert G >= W + 1

    # Channel-first flat layout: channels on sublanes, H*W on lanes (free reshape).
    x_flat = x_nchw.reshape(N, C, HW)

    # Column-edge validity masks (compile-time constants).  Because the mask is
    # per output lane, mask ⊙ (W @ P) == W @ (mask ⊙ P), so one mask per kx
    # column group is applied to the (Cout, HW) partial output.  Row (ky) border
    # taps need no mask: they read the zero guard.
    xs = np.arange(HW) % W
    masks_np = np.ones((2, 1, HW), np.float32)
    masks_np[0, 0, xs == 0] = 0.0        # left  mask: kx offset -1 invalid at x == 0
    masks_np[1, 0, xs == W - 1] = 0.0    # right mask: kx offset +1 invalid at x == W-1
    masks = jnp.asarray(masks_np)

    def kernel(x_ref, m_ref, wx_ref, bx_ref, wt_ref, bt_ref, wd_ref, bd_ref,
               o_ref, pad_ref):
        # Zero only the guard columns; the image region is overwritten by the
        # staging store of every cba (cheaper than zeroing the whole buffer).
        pad_ref[:, 0:G] = jnp.zeros((C, G), jnp.float32)
        pad_ref[:, G + HW:] = jnp.zeros((C, G), jnp.float32)
        mask_l = m_ref[0]                              # (1, HW)
        mask_r = m_ref[1]

        def cba(inp, w_ref, b_ref):
            """conv3x3(pad=1, stride=1, no bias) + folded-BN shift + ReLU.

            inp: (Cin, HW) f32; w_ref: (3, Cout, 3*Cin) bf16; b_ref: (Cout, 1).
            One bf16 MXU matmul per kx column group (K = 3*Cin), f32 accumulate.
            """
            cin = inp.shape[0]
            pad_ref[0:cin, G:G + HW] = inp             # stage once (lane-aligned)

            def patch(dx):                             # (3*Cin, HW) bf16
                return jnp.concatenate(
                    [pad_ref[0:cin, G - W + dx:G - W + dx + HW],   # ky = 0
                     pad_ref[0:cin, G + dx:G + dx + HW],           # ky = 1
                     pad_ref[0:cin, G + W + dx:G + W + dx + HW]],  # ky = 2
                    axis=0).astype(jnp.bfloat16)

            acc_c = jnp.dot(w_ref[1], patch(0), preferred_element_type=jnp.float32)
            acc_l = jnp.dot(w_ref[0], patch(-1), preferred_element_type=jnp.float32) * mask_l
            acc_r = jnp.dot(w_ref[2], patch(1), preferred_element_type=jnp.float32) * mask_r
            return jnp.maximum(acc_c + acc_l + acc_r + b_ref[...], 0.0)

        xin = x_ref[0]                                  # (C, HW)
        yx = cba(xin, wx_ref, bx_ref)                   # [0:c_half]=upconv, rest=ctx_in
        up = yx[0:c_half]
        t = yx[c_half:c_half + bw]
        yt = cba(t, wt_ref, bt_ref)                     # [0:bw]=ctx_up, [bw:]=ctx_down
        cup = yt[0:bw]
        cd = yt[bw:2 * bw]
        cd2 = cba(cd, wd_ref, bd_ref)                   # ctx_down2

        # torch.cat([upconv, torch.cat([ctx_up, ctx_down2], 1)], 1)
        o_ref[0, 0:c_half, :] = up
        o_ref[0, c_half:c_half + bw, :] = cup
        o_ref[0, c_half + bw:c_out, :] = cd2

    flops = 2 * N * HW * 9 * ((c_half + bw) * C + (2 * bw) * bw + bw * bw)
    bytes_accessed = (4 * (x_flat.size + N * c_out * HW + masks.size
                           + kp["bx"].size + kp["bt"].size + kp["bd"].size)
                      + 2 * (kp["wx"].size + kp["wt"].size + kp["wd"].size))

    out = pl.pallas_call(
        kernel,
        out_shape=jax.ShapeDtypeStruct((N, c_out, HW), jnp.float32),
        grid=(N,),
        in_specs=[
            pl.BlockSpec((1, C, HW), lambda n: (n, 0, 0)),
            _whole_array_spec(masks.shape),
            _whole_array_spec(kp["wx"].shape),
            _whole_array_spec(kp["bx"].shape),
            _whole_array_spec(kp["wt"].shape),
            _whole_array_spec(kp["bt"].shape),
            _whole_array_spec(kp["wd"].shape),
            _whole_array_spec(kp["bd"].shape),
        ],
        out_specs=pl.BlockSpec((1, c_out, HW), lambda n: (n, 0, 0)),
        scratch_shapes=[pltpu.VMEM((C, HW + 2 * G), jnp.float32)],
        compiler_params=pltpu.CompilerParams(
            dimension_semantics=("parallel",)),   # batch elems independent (v7x: 2 TCs)
        cost_estimate=pl.CostEstimate(
            flops=flops, transcendentals=0, bytes_accessed=bytes_accessed),
    )(x_flat, masks, kp["wx"], kp["bx"], kp["wt"], kp["bt"], kp["wd"], kp["bd"])

    return out.reshape(N, c_out, H, W)


# ---------------- pure-JAX reference (for correctness check) ----------------
def _cba_ref(x_nchw, p):
    y = jax.lax.conv_general_dilated(
        x_nchw, p["w_oihw"], window_strides=(1, 1), padding=((1, 1), (1, 1)),
        dimension_numbers=("NCHW", "OIHW", "NCHW"))
    y = y * p["scale"][None, :, None, None] + p["shift"][None, :, None, None]
    return jnp.maximum(y, 0.0)


def detect_module_ref(x_nchw, params):
    up = _cba_ref(x_nchw, params["upconv"])
    t = _cba_ref(x_nchw, params["ctx_in"])
    cup = _cba_ref(t, params["ctx_up"])
    cd = _cba_ref(t, params["ctx_down"])
    cd2 = _cba_ref(cd, params["ctx_down2"])
    return jnp.concatenate([up, cup, cd2], axis=1)


if __name__ == "__main__":
    N, C, H, W = 2, 16, 16, 16  # in_channels must be divisible by 4
    key = jax.random.PRNGKey(0)
    kx, kparam = jax.random.split(key)
    x = jax.random.normal(kx, (N, C, H, W), jnp.float32)
    params = detect_module_params(kparam, C)
    kparams = prepare_kernel_params(params)

    out = detect_module_forward(x, kparams)
    out = jax.block_until_ready(out)

    ref = detect_module_ref(x, params)
    assert out.shape == (N, C, H, W), out.shape
    max_err = float(jnp.max(jnp.abs(out - ref)))
    # bf16 MXU operands (f32 accumulation) -> relaxed tolerance vs. the f32 reference.
    assert jnp.allclose(out, ref, rtol=5e-2, atol=5e-2), max_err
    print("KERNEL_OK")
</pallas_src>

<mosaic_0001>
module attributes {stable_mosaic.version = 11 : i64} {
  func.func @kernel(%arg0: i32, %arg1: memref<1x16x256xf32, #tpu.memory_space<vmem>>, %arg2: memref<2x1x256xf32, #tpu.memory_space<vmem>>, %arg3: memref<3x12x48xbf16, #tpu.memory_space<vmem>>, %arg4: memref<12x1xf32, #tpu.memory_space<vmem>>, %arg5: memref<3x8x12xbf16, #tpu.memory_space<vmem>>, %arg6: memref<8x1xf32, #tpu.memory_space<vmem>>, %arg7: memref<3x4x12xbf16, #tpu.memory_space<vmem>>, %arg8: memref<4x1xf32, #tpu.memory_space<vmem>>, %arg9: memref<1x16x256xf32, #tpu.memory_space<vmem>>, %arg10: memref<16x512xf32, #tpu.memory_space<vmem>>) attributes {dimension_semantics = [#tpu.dimension_semantics<parallel>], iteration_bounds = array<i64: 2>, scalar_prefetch = 0 : i64, scratch_operands = 1 : i64, tpu.core_type = #tpu.core_type<tc>, window_params = [{transform_indices = @transform_0, window_bounds = array<i64: 1, 16, 256>}, {pipeline_mode = #tpu.pipeline_mode<synchronous>, transform_indices = @transform_1, window_bounds = array<i64: 2, 1, 256>}, {pipeline_mode = #tpu.pipeline_mode<synchronous>, transform_indices = @transform_2, window_bounds = array<i64: 3, 12, 48>}, {pipeline_mode = #tpu.pipeline_mode<synchronous>, transform_indices = @transform_3, window_bounds = array<i64: 12, 1>}, {pipeline_mode = #tpu.pipeline_mode<synchronous>, transform_indices = @transform_4, window_bounds = array<i64: 3, 8, 12>}, {pipeline_mode = #tpu.pipeline_mode<synchronous>, transform_indices = @transform_5, window_bounds = array<i64: 8, 1>}, {pipeline_mode = #tpu.pipeline_mode<synchronous>, transform_indices = @transform_6, window_bounds = array<i64: 3, 4, 12>}, {pipeline_mode = #tpu.pipeline_mode<synchronous>, transform_indices = @transform_7, window_bounds = array<i64: 4, 1>}, {transform_indices = @transform_8, window_bounds = array<i64: 1, 16, 256>}]} {
    %cst = arith.constant 0.000000e+00 : f32
    %0 = vector.broadcast %cst : f32 to vector<16x128xf32>
    %c0 = arith.constant 0 : index
    %c0_0 = arith.constant 0 : index
    %1 = vector.load %arg10[%c0, %c0_0] : memref<16x512xf32, #tpu.memory_space<vmem>>, vector<16x128xf32>
    tpu.vector_store %arg10[%c0, %c0_0], %0 {strides = array<i32>} : memref<16x512xf32, #tpu.memory_space<vmem>>, vector<16x128xf32>,
    %cst_1 = arith.constant 0.000000e+00 : f32
    %2 = vector.broadcast %cst_1 : f32 to vector<16x128xf32>
    %c0_2 = arith.constant 0 : index
    %c384 = arith.constant 384 : index
    %3 = vector.load %arg10[%c0_2, %c384] : memref<16x512xf32, #tpu.memory_space<vmem>>, vector<16x128xf32>
    tpu.vector_store %arg10[%c0_2, %c384], %2 {strides = array<i32>} : memref<16x512xf32, #tpu.memory_space<vmem>>, vector<16x128xf32>,
    %c0_3 = arith.constant 0 : index
    %c0_4 = arith.constant 0 : index
    %c0_5 = arith.constant 0 : index
    %4 = vector.load %arg2[%c0_3, %c0_4, %c0_5] : memref<2x1x256xf32, #tpu.memory_space<vmem>>, vector<1x1x256xf32>
    %5 = vector.shape_cast %4 : vector<1x1x256xf32> to vector<1x256xf32>
    %c1 = arith.constant 1 : index
    %c0_6 = arith.constant 0 : index
    %c0_7 = arith.constant 0 : index
    %6 = vector.load %arg2[%c1, %c0_6, %c0_7] : memref<2x1x256xf32, #tpu.memory_space<vmem>>, vector<1x1x256xf32>
    %7 = vector.shape_cast %6 : vector<1x1x256xf32> to vector<1x256xf32>
    %c0_8 = arith.constant 0 : index
    %c0_9 = arith.constant 0 : index
    %c0_10 = arith.constant 0 : index
    %8 = vector.load %arg1[%c0_8, %c0_9, %c0_10] : memref<1x16x256xf32, #tpu.memory_space<vmem>>, vector<1x16x256xf32>
    %9 = vector.shape_cast %8 : vector<1x16x256xf32> to vector<16x256xf32>
    %c0_11 = arith.constant 0 : index
    %c128 = arith.constant 128 : index
    %10 = vector.load %arg10[%c0_11, %c128] : memref<16x512xf32, #tpu.memory_space<vmem>>, vector<16x256xf32>
    tpu.vector_store %arg10[%c0_11, %c128], %9 {strides = array<i32>} : memref<16x512xf32, #tpu.memory_space<vmem>>, vector<16x256xf32>,
    %c1_12 = arith.constant 1 : index
    %c0_13 = arith.constant 0 : index
    %c0_14 = arith.constant 0 : index
    %11 = vector.load %arg3[%c1_12, %c0_13, %c0_14] : memref<3x12x48xbf16, #tpu.memory_space<vmem>>, vector<1x12x48xbf16>
    %12 = vector.shape_cast %11 : vector<1x12x48xbf16> to vector<12x48xbf16>
    %c0_15 = arith.constant 0 : index
    %c112 = arith.constant 112 : index
    %13 = vector.load %arg10[%c0_15, %c112] : memref<16x512xf32, #tpu.memory_space<vmem>>, vector<16x256xf32>
    %c0_16 = arith.constant 0 : index
    %c128_17 = arith.constant 128 : index
    %14 = vector.load %arg10[%c0_16, %c128_17] : memref<16x512xf32, #tpu.memory_space<vmem>>, vector<16x256xf32>
    %c0_18 = arith.constant 0 : index
    %c144 = arith.constant 144 : index
    %15 = vector.load %arg10[%c0_18, %c144] : memref<16x512xf32, #tpu.memory_space<vmem>>, vector<16x256xf32>
    %16 = tpu.concatenate %13, %14, %15 in 0 : vector<16x256xf32>, vector<16x256xf32>, vector<16x256xf32> -> vector<48x256xf32>
    %17 = arith.truncf %16 : vector<48x256xf32> to vector<48x256xbf16>
    %cst_19 = arith.constant dense<0.000000e+00> : vector<12x256xf32>
    %18 = tpu.matmul %12, %17, %cst_19 {dimension_numbers = #tpu.dot_dimension_numbers<[1], [0], [0], [1], [0, 0, 1, 1], [], []>} : vector<12x48xbf16>, vector<48x256xbf16>, vector<12x256xf32> -> vector<12x256xf32>
    %c0_20 = arith.constant 0 : index
    %c0_21 = arith.constant 0 : index
    %c0_22 = arith.constant 0 : index
    %19 = vector.load %arg3[%c0_20, %c0_21, %c0_22] : memref<3x12x48xbf16, #tpu.memory_space<vmem>>, vector<1x12x48xbf16>
    %20 = vector.shape_cast %19 : vector<1x12x48xbf16> to vector<12x48xbf16>
    %c0_23 = arith.constant 0 : index
    %c111 = arith.constant 111 : index
    %21 = vector.load %arg10[%c0_23, %c111] : memref<16x512xf32, #tpu.memory_space<vmem>>, vector<16x256xf32>
    %c0_24 = arith.constant 0 : index
    %c127 = arith.constant 127 : index
    %22 = vector.load %arg10[%c0_24, %c127] : memref<16x512xf32, #tpu.memory_space<vmem>>, vector<16x256xf32>
    %c0_25 = arith.constant 0 : index
    %c143 = arith.constant 143 : index
    %23 = vector.load %arg10[%c0_25, %c143] : memref<16x512xf32, #tpu.memory_space<vmem>>, vector<16x256xf32>
    %24 = tpu.concatenate %21, %22, %23 in 0 : vector<16x256xf32>, vector<16x256xf32>, vector<16x256xf32> -> vector<48x256xf32>
    %25 = arith.truncf %24 : vector<48x256xf32> to vector<48x256xbf16>
    %cst_26 = arith.constant dense<0.000000e+00> : vector<12x256xf32>
    %26 = tpu.matmul %20, %25, %cst_26 {dimension_numbers = #tpu.dot_dimension_numbers<[1], [0], [0], [1], [0, 0, 1, 1], [], []>} : vector<12x48xbf16>, vector<48x256xbf16>, vector<12x256xf32> -> vector<12x256xf32>
    %27 = vector.broadcast %5 : vector<1x256xf32> to vector<12x256xf32>
    %28 = arith.mulf %26, %27 : vector<12x256xf32>
    %c2 = arith.constant 2 : index
    %c0_27 = arith.constant 0 : index
    %c0_28 = arith.constant 0 : index
    %29 = vector.load %arg3[%c2, %c0_27, %c0_28] : memref<3x12x48xbf16, #tpu.memory_space<vmem>>, vector<1x12x48xbf16>
    %30 = vector.shape_cast %29 : vector<1x12x48xbf16> to vector<12x48xbf16>
    %c0_29 = arith.constant 0 : index
    %c113 = arith.constant 113 : index
    %31 = vector.load %arg10[%c0_29, %c113] : memref<16x512xf32, #tpu.memory_space<vmem>>, vector<16x256xf32>
    %c0_30 = arith.constant 0 : index
    %c129 = arith.constant 129 : index
    %32 = vector.load %arg10[%c0_30, %c129] : memref<16x512xf32, #tpu.memory_space<vmem>>, vector<16x256xf32>
    %c0_31 = arith.constant 0 : index
    %c145 = arith.constant 145 : index
    %33 = vector.load %arg10[%c0_31, %c145] : memref<16x512xf32, #tpu.memory_space<vmem>>, vector<16x256xf32>
    %34 = tpu.concatenate %31, %32, %33 in 0 : vector<16x256xf32>, vector<16x256xf32>, vector<16x256xf32> -> vector<48x256xf32>
    %35 = arith.truncf %34 : vector<48x256xf32> to vector<48x256xbf16>
    %cst_32 = arith.constant dense<0.000000e+00> : vector<12x256xf32>
    %36 = tpu.matmul %30, %35, %cst_32 {dimension_numbers = #tpu.dot_dimension_numbers<[1], [0], [0], [1], [0, 0, 1, 1], [], []>} : vector<12x48xbf16>, vector<48x256xbf16>, vector<12x256xf32> -> vector<12x256xf32>
    %37 = vector.broadcast %7 : vector<1x256xf32> to vector<12x256xf32>
    %38 = arith.mulf %36, %37 : vector<12x256xf32>
    %39 = arith.addf %18, %28 : vector<12x256xf32>
    %40 = arith.addf %39, %38 : vector<12x256xf32>
    %c0_33 = arith.constant 0 : index
    %c0_34 = arith.constant 0 : index
    %41 = vector.load %arg4[%c0_33, %c0_34] : memref<12x1xf32, #tpu.memory_space<vmem>>, vector<12x1xf32>
    %42 = vector.broadcast %41 : vector<12x1xf32> to vector<12x256xf32>
    %43 = arith.addf %40, %42 : vector<12x256xf32>
    %cst_35 = arith.constant 0.000000e+00 : f32
    %44 = vector.broadcast %cst_35 : f32 to vector<12x256xf32>
    %45 = arith.maximumf %43, %44 : vector<12x256xf32>
    %46 = vector.extract_strided_slice %45 {offsets = [0, 0], sizes = [8, 256], strides = [1, 1]} : vector<12x256xf32> to vector<8x256xf32>
    %47 = vector.extract_strided_slice %45 {offsets = [8, 0], sizes = [4, 256], strides = [1, 1]} : vector<12x256xf32> to vector<4x256xf32>
    %c0_36 = arith.constant 0 : index
    %c128_37 = arith.constant 128 : index
    %48 = vector.load %arg10[%c0_36, %c128_37] : memref<16x512xf32, #tpu.memory_space<vmem>>, vector<4x256xf32>
    tpu.vector_store %arg10[%c0_36, %c128_37], %47 {strides = array<i32>} : memref<16x512xf32, #tpu.memory_space<vmem>>, vector<4x256xf32>,
    %c1_38 = arith.constant 1 : index
    %c0_39 = arith.constant 0 : index
    %c0_40 = arith.constant 0 : index
    %49 = vector.load %arg5[%c1_38, %c0_39, %c0_40] : memref<3x8x12xbf16, #tpu.memory_space<vmem>>, vector<1x8x12xbf16>
    %50 = vector.shape_cast %49 : vector<1x8x12xbf16> to vector<8x12xbf16>
    %c0_41 = arith.constant 0 : index
    %c112_42 = arith.constant 112 : index
    %51 = vector.load %arg10[%c0_41, %c112_42] : memref<16x512xf32, #tpu.memory_space<vmem>>, vector<4x256xf32>
    %c0_43 = arith.constant 0 : index
    %c128_44 = arith.constant 128 : index
    %52 = vector.load %arg10[%c0_43, %c128_44] : memref<16x512xf32, #tpu.memory_space<vmem>>, vector<4x256xf32>
    %c0_45 = arith.constant 0 : index
    %c144_46 = arith.constant 144 : index
    %53 = vector.load %arg10[%c0_45, %c144_46] : memref<16x512xf32, #tpu.memory_space<vmem>>, vector<4x256xf32>
    %54 = tpu.concatenate %51, %52, %53 in 0 : vector<4x256xf32>, vector<4x256xf32>, vector<4x256xf32> -> vector<12x256xf32>
    %55 = arith.truncf %54 : vector<12x256xf32> to vector<12x256xbf16>
    %cst_47 = arith.constant dense<0.000000e+00> : vector<8x256xf32>
    %56 = tpu.matmul %50, %55, %cst_47 {dimension_numbers = #tpu.dot_dimension_numbers<[1], [0], [0], [1], [0, 0, 1, 1], [], []>} : vector<8x12xbf16>, vector<12x256xbf16>, vector<8x256xf32> -> vector<8x256xf32>
    %c0_48 = arith.constant 0 : index
    %c0_49 = arith.constant 0 : index
    %c0_50 = arith.constant 0 : index
    %57 = vector.load %arg5[%c0_48, %c0_49, %c0_50] : memref<3x8x12xbf16, #tpu.memory_space<vmem>>, vector<1x8x12xbf16>
    %58 = vector.shape_cast %57 : vector<1x8x12xbf16> to vector<8x12xbf16>
    %c0_51 = arith.constant 0 : index
    %c111_52 = arith.constant 111 : index
    %59 = vector.load %arg10[%c0_51, %c111_52] : memref<16x512xf32, #tpu.memory_space<vmem>>, vector<4x256xf32>
    %c0_53 = arith.constant 0 : index
    %c127_54 = arith.constant 127 : index
    %60 = vector.load %arg10[%c0_53, %c127_54] : memref<16x512xf32, #tpu.memory_space<vmem>>, vector<4x256xf32>
    %c0_55 = arith.constant 0 : index
    %c143_56 = arith.constant 143 : index
    %61 = vector.load %arg10[%c0_55, %c143_56] : memref<16x512xf32, #tpu.memory_space<vmem>>, vector<4x256xf32>
    %62 = tpu.concatenate %59, %60, %61 in 0 : vector<4x256xf32>, vector<4x256xf32>, vector<4x256xf32> -> vector<12x256xf32>
    %63 = arith.truncf %62 : vector<12x256xf32> to vector<12x256xbf16>
    %cst_57 = arith.constant dense<0.000000e+00> : vector<8x256xf32>
    %64 = tpu.matmul %58, %63, %cst_57 {dimension_numbers = #tpu.dot_dimension_numbers<[1], [0], [0], [1], [0, 0, 1, 1], [], []>} : vector<8x12xbf16>, vector<12x256xbf16>, vector<8x256xf32> -> vector<8x256xf32>
    %65 = vector.broadcast %5 : vector<1x256xf32> to vector<8x256xf32>
    %66 = arith.mulf %64, %65 : vector<8x256xf32>
    %c2_58 = arith.constant 2 : index
    %c0_59 = arith.constant 0 : index
    %c0_60 = arith.constant 0 : index
    %67 = vector.load %arg5[%c2_58, %c0_59, %c0_60] : memref<3x8x12xbf16, #tpu.memory_space<vmem>>, vector<1x8x12xbf16>
    %68 = vector.shape_cast %67 : vector<1x8x12xbf16> to vector<8x12xbf16>
    %c0_61 = arith.constant 0 : index
    %c113_62 = arith.constant 113 : index
    %69 = vector.load %arg10[%c0_61, %c113_62] : memref<16x512xf32, #tpu.memory_space<vmem>>, vector<4x256xf32>
    %c0_63 = arith.constant 0 : index
    %c129_64 = arith.constant 129 : index
    %70 = vector.load %arg10[%c0_63, %c129_64] : memref<16x512xf32, #tpu.memory_space<vmem>>, vector<4x256xf32>
    %c0_65 = arith.constant 0 : index
    %c145_66 = arith.constant 145 : index
    %71 = vector.load %arg10[%c0_65, %c145_66] : memref<16x512xf32, #tpu.memory_space<vmem>>, vector<4x256xf32>
    %72 = tpu.concatenate %69, %70, %71 in 0 : vector<4x256xf32>, vector<4x256xf32>, vector<4x256xf32> -> vector<12x256xf32>
    %73 = arith.truncf %72 : vector<12x256xf32> to vector<12x256xbf16>
    %cst_67 = arith.constant dense<0.000000e+00> : vector<8x256xf32>
    %74 = tpu.matmul %68, %73, %cst_67 {dimension_numbers = #tpu.dot_dimension_numbers<[1], [0], [0], [1], [0, 0, 1, 1], [], []>} : vector<8x12xbf16>, vector<12x256xbf16>, vector<8x256xf32> -> vector<8x256xf32>
    %75 = vector.broadcast %7 : vector<1x256xf32> to vector<8x256xf32>
    %76 = arith.mulf %74, %75 : vector<8x256xf32>
    %77 = arith.addf %56, %66 : vector<8x256xf32>
    %78 = arith.addf %77, %76 : vector<8x256xf32>
    %c0_68 = arith.constant 0 : index
    %c0_69 = arith.constant 0 : index
    %79 = vector.load %arg6[%c0_68, %c0_69] : memref<8x1xf32, #tpu.memory_space<vmem>>, vector<8x1xf32>
    %80 = vector.broadcast %79 : vector<8x1xf32> to vector<8x256xf32>
    %81 = arith.addf %78, %80 : vector<8x256xf32>
    %cst_70 = arith.constant 0.000000e+00 : f32
    %82 = vector.broadcast %cst_70 : f32 to vector<8x256xf32>
    %83 = arith.maximumf %81, %82 : vector<8x256xf32>
    %84 = vector.extract_strided_slice %83 {offsets = [0, 0], sizes = [4, 256], strides = [1, 1]} : vector<8x256xf32> to vector<4x256xf32>
    %85 = vector.extract_strided_slice %83 {offsets = [4, 0], sizes = [4, 256], strides = [1, 1]} : vector<8x256xf32> to vector<4x256xf32>
    %c0_71 = arith.constant 0 : index
    %c128_72 = arith.constant 128 : index
    %86 = vector.load %arg10[%c0_71, %c128_72] : memref<16x512xf32, #tpu.memory_space<vmem>>, vector<4x256xf32>
    tpu.vector_store %arg10[%c0_71, %c128_72], %85 {strides = array<i32>} : memref<16x512xf32, #tpu.memory_space<vmem>>, vector<4x256xf32>,
    %c1_73 = arith.constant 1 : index
    %c0_74 = arith.constant 0 : index
    %c0_75 = arith.constant 0 : index
    %87 = vector.load %arg7[%c1_73, %c0_74, %c0_75] : memref<3x4x12xbf16, #tpu.memory_space<vmem>>, vector<1x4x12xbf16>
    %88 = vector.shape_cast %87 : vector<1x4x12xbf16> to vector<4x12xbf16>
    %c0_76 = arith.constant 0 : index
    %c112_77 = arith.constant 112 : index
    %89 = vector.load %arg10[%c0_76, %c112_77] : memref<16x512xf32, #tpu.memory_space<vmem>>, vector<4x256xf32>
    %c0_78 = arith.constant 0 : index
    %c128_79 = arith.constant 128 : index
    %90 = vector.load %arg10[%c0_78, %c128_79] : memref<16x512xf32, #tpu.memory_space<vmem>>, vector<4x256xf32>
    %c0_80 = arith.constant 0 : index
    %c144_81 = arith.constant 144 : index
    %91 = vector.load %arg10[%c0_80, %c144_81] : memref<16x512xf32, #tpu.memory_space<vmem>>, vector<4x256xf32>
    %92 = tpu.concatenate %89, %90, %91 in 0 : vector<4x256xf32>, vector<4x256xf32>, vector<4x256xf32> -> vector<12x256xf32>
    %93 = arith.truncf %92 : vector<12x256xf32> to vector<12x256xbf16>
    %cst_82 = arith.constant dense<0.000000e+00> : vector<4x256xf32>
    %94 = tpu.matmul %88, %93, %cst_82 {dimension_numbers = #tpu.dot_dimension_numbers<[1], [0], [0], [1], [0, 0, 1, 1], [], []>} : vector<4x12xbf16>, vector<12x256xbf16>, vector<4x256xf32> -> vector<4x256xf32>
    %c0_83 = arith.constant 0 : index
    %c0_84 = arith.constant 0 : index
    %c0_85 = arith.constant 0 : index
    %95 = vector.load %arg7[%c0_83, %c0_84, %c0_85] : memref<3x4x12xbf16, #tpu.memory_space<vmem>>, vector<1x4x12xbf16>
    %96 = vector.shape_cast %95 : vector<1x4x12xbf16> to vector<4x12xbf16>
    %c0_86 = arith.constant 0 : index
    %c111_87 = arith.constant 111 : index
    %97 = vector.load %arg10[%c0_86, %c111_87] : memref<16x512xf32, #tpu.memory_space<vmem>>, vector<4x256xf32>
    %c0_88 = arith.constant 0 : index
    %c127_89 = arith.constant 127 : index
    %98 = vector.load %arg10[%c0_88, %c127_89] : memref<16x512xf32, #tpu.memory_space<vmem>>, vector<4x256xf32>
    %c0_90 = arith.constant 0 : index
    %c143_91 = arith.constant 143 : index
    %99 = vector.load %arg10[%c0_90, %c143_91] : memref<16x512xf32, #tpu.memory_space<vmem>>, vector<4x256xf32>
    %100 = tpu.concatenate %97, %98, %99 in 0 : vector<4x256xf32>, vector<4x256xf32>, vector<4x256xf32> -> vector<12x256xf32>
    %101 = arith.truncf %100 : vector<12x256xf32> to vector<12x256xbf16>
    %cst_92 = arith.constant dense<0.000000e+00> : vector<4x256xf32>
    %102 = tpu.matmul %96, %101, %cst_92 {dimension_numbers = #tpu.dot_dimension_numbers<[1], [0], [0], [1], [0, 0, 1, 1], [], []>} : vector<4x12xbf16>, vector<12x256xbf16>, vector<4x256xf32> -> vector<4x256xf32>
    %103 = vector.broadcast %5 : vector<1x256xf32> to vector<4x256xf32>
    %104 = arith.mulf %102, %103 : vector<4x256xf32>
    %c2_93 = arith.constant 2 : index
    %c0_94 = arith.constant 0 : index
    %c0_95 = arith.constant 0 : index
    %105 = vector.load %arg7[%c2_93, %c0_94, %c0_95] : memref<3x4x12xbf16, #tpu.memory_space<vmem>>, vector<1x4x12xbf16>
    %106 = vector.shape_cast %105 : vector<1x4x12xbf16> to vector<4x12xbf16>
    %c0_96 = arith.constant 0 : index
    %c113_97 = arith.constant 113 : index
    %107 = vector.load %arg10[%c0_96, %c113_97] : memref<16x512xf32, #tpu.memory_space<vmem>>, vector<4x256xf32>
    %c0_98 = arith.constant 0 : index
    %c129_99 = arith.constant 129 : index
    %108 = vector.load %arg10[%c0_98, %c129_99] : memref<16x512xf32, #tpu.memory_space<vmem>>, vector<4x256xf32>
    %c0_100 = arith.constant 0 : index
    %c145_101 = arith.constant 145 : index
    %109 = vector.load %arg10[%c0_100, %c145_101] : memref<16x512xf32, #tpu.memory_space<vmem>>, vector<4x256xf32>
    %110 = tpu.concatenate %107, %108, %109 in 0 : vector<4x256xf32>, vector<4x256xf32>, vector<4x256xf32> -> vector<12x256xf32>
    %111 = arith.truncf %110 : vector<12x256xf32> to vector<12x256xbf16>
    %cst_102 = arith.constant dense<0.000000e+00> : vector<4x256xf32>
    %112 = tpu.matmul %106, %111, %cst_102 {dimension_numbers = #tpu.dot_dimension_numbers<[1], [0], [0], [1], [0, 0, 1, 1], [], []>} : vector<4x12xbf16>, vector<12x256xbf16>, vector<4x256xf32> -> vector<4x256xf32>
    %113 = vector.broadcast %7 : vector<1x256xf32> to vector<4x256xf32>
    %114 = arith.mulf %112, %113 : vector<4x256xf32>
    %115 = arith.addf %94, %104 : vector<4x256xf32>
    %116 = arith.addf %115, %114 : vector<4x256xf32>
    %c0_103 = arith.constant 0 : index
    %c0_104 = arith.constant 0 : index
    %117 = vector.load %arg8[%c0_103, %c0_104] : memref<4x1xf32, #tpu.memory_space<vmem>>, vector<4x1xf32>
    %118 = vector.broadcast %117 : vector<4x1xf32> to vector<4x256xf32>
    %119 = arith.addf %116, %118 : vector<4x256xf32>
    %cst_105 = arith.constant 0.000000e+00 : f32
    %120 = vector.broadcast %cst_105 : f32 to vector<4x256xf32>
    %121 = arith.maximumf %119, %120 : vector<4x256xf32>
    %c0_106 = arith.constant 0 : index
    %c0_107 = arith.constant 0 : index
    %c0_108 = arith.constant 0 : index
    %122 = vector.load %arg9[%c0_106, %c0_107, %c0_108] : memref<1x16x256xf32, #tpu.memory_space<vmem>>, vector<1x8x256xf32>
    %123 = vector.shape_cast %122 : vector<1x8x256xf32> to vector<8x256xf32>
    %124 = vector.shape_cast %46 : vector<8x256xf32> to vector<1x8x256xf32>
    tpu.vector_store %arg9[%c0_106, %c0_107, %c0_108], %124 {strides = array<i32>} : memref<1x16x256xf32, #tpu.memory_space<vmem>>, vector<1x8x256xf32>,
    %c0_109 = arith.constant 0 : index
    %c8 = arith.constant 8 : index
    %c0_110 = arith.constant 0 : index
    %125 = vector.load %arg9[%c0_109, %c8, %c0_110] : memref<1x16x256xf32, #tpu.memory_space<vmem>>, vector<1x4x256xf32>
    %126 = vector.shape_cast %125 : vector<1x4x256xf32> to vector<4x256xf32>
    %127 = vector.shape_cast %84 : vector<4x256xf32> to vector<1x4x256xf32>
    tpu.vector_store %arg9[%c0_109, %c8, %c0_110], %127 {strides = array<i32>} : memref<1x16x256xf32, #tpu.memory_space<vmem>>, vector<1x4x256xf32>,
    %c0_111 = arith.constant 0 : index
    %c12 = arith.constant 12 : index
    %c0_112 = arith.constant 0 : index
    %128 = vector.load %arg9[%c0_111, %c12, %c0_112] : memref<1x16x256xf32, #tpu.memory_space<vmem>>, vector<1x4x256xf32>
    %129 = vector.shape_cast %128 : vector<1x4x256xf32> to vector<4x256xf32>
    %130 = vector.shape_cast %121 : vector<4x256xf32> to vector<1x4x256xf32>
    tpu.vector_store %arg9[%c0_111, %c12, %c0_112], %130 {strides = array<i32>} : memref<1x16x256xf32, #tpu.memory_space<vmem>>, vector<1x4x256xf32>,
    return
  }
  func.func @transform_0(%arg0: i32) -> (i32, i32, i32) {
    %c0_i32 = arith.constant 0 : i32
    %c0_i32_0 = arith.constant 0 : i32
    %c0_i32_1 = arith.constant 0 : i32
    return %arg0, %c0_i32, %c0_i32_0 : i32, i32, i32
  }
  func.func @transform_1(%arg0: i32) -> (i32, i32, i32) {
    %c0_i32 = arith.constant 0 : i32
    %c0_i32_0 = arith.constant 0 : i32
    %c0_i32_1 = arith.constant 0 : i32
    %c0_i32_2 = arith.constant 0 : i32
    return %c0_i32, %c0_i32_0, %c0_i32_1 : i32, i32, i32
  }
  func.func @transform_2(%arg0: i32) -> (i32, i32, i32) {
    %c0_i32 = arith.constant 0 : i32
    %c0_i32_0 = arith.constant 0 : i32
    %c0_i32_1 = arith.constant 0 : i32
    %c0_i32_2 = arith.constant 0 : i32
    return %c0_i32, %c0_i32_0, %c0_i32_1 : i32, i32, i32
  }
  func.func @transform_3(%arg0: i32) -> (i32, i32) {
    %c0_i32 = arith.constant 0 : i32
    %c0_i32_0 = arith.constant 0 : i32
    %c0_i32_1 = arith.constant 0 : i32
    return %c0_i32, %c0_i32_0 : i32, i32
  }
  func.func @transform_4(%arg0: i32) -> (i32, i32, i32) {
    %c0_i32 = arith.constant 0 : i32
    %c0_i32_0 = arith.constant 0 : i32
    %c0_i32_1 = arith.constant 0 : i32
    %c0_i32_2 = arith.constant 0 : i32
    return %c0_i32, %c0_i32_0, %c0_i32_1 : i32, i32, i32
  }
  func.func @transform_5(%arg0: i32) -> (i32, i32) {
    %c0_i32 = arith.constant 0 : i32
    %c0_i32_0 = arith.constant 0 : i32
    %c0_i32_1 = arith.constant 0 : i32
    return %c0_i32, %c0_i32_0 : i32, i32
  }
  func.func @transform_6(%arg0: i32) -> (i32, i32, i32) {
    %c0_i32 = arith.constant 0 : i32
    %c0_i32_0 = arith.constant 0 : i32
    %c0_i32_1 = arith.constant 0 : i32
    %c0_i32_2 = arith.constant 0 : i32
    return %c0_i32, %c0_i32_0, %c0_i32_1 : i32, i32, i32
  }
  func.func @transform_7(%arg0: i32) -> (i32, i32) {
    %c0_i32 = arith.constant 0 : i32
    %c0_i32_0 = arith.constant 0 : i32
    %c0_i32_1 = arith.constant 0 : i32
    return %c0_i32, %c0_i32_0 : i32, i32
  }
  func.func @transform_8(%arg0: i32) -> (i32, i32, i32) {
    %c0_i32 = arith.constant 0 : i32
    %c0_i32_0 = arith.constant 0 : i32
    %c0_i32_1 = arith.constant 0 : i32
    return %arg0, %c0_i32, %c0_i32_0 : i32, i32, i32
  }
}

</mosaic_0001>

<bundles_post_ra>
// kernel: detect_module_forward.1
= control target key start
LH: loop header
LB: loop body
LE: loop exit
PB: predicated region body
PF: predicated region fallthrough
CT: control target
= control target key end

     0   :  { %s1515_s27 = smov 0   ;;  %s1803_s0 = inlined_call_operand.vmem [shape: f32[2,16,256], index: 0, kind: input, shape index: {}]   ;;  %s1804_s1 = inlined_call_operand.vmem [shape: f32[2,1,256], index: 1, kind: input, shape index: {}]   ;;  %s1805_s2 = inlined_call_operand.vmem [shape: bf16[3,12,48], index: 2, kind: input, shape index: {}]   ;;  %s1806_s3 = inlined_call_operand.vmem [shape: f32[12,1], index: 3, kind: input, shape index: {}]   ;;  %s1807_s4 = inlined_call_operand.vmem [shape: bf16[3,8,12], index: 4, kind: input, shape index: {}]   ;;  %s1808_s5 = inlined_call_operand.vmem [shape: f32[8,1], index: 5, kind: input, shape index: {}]   ;;  %s1809_s6 = inlined_call_operand.vmem [shape: bf16[3,4,12], index: 6, kind: input, shape index: {}]   ;;  %s1810_s7 = inlined_call_operand.vmem [shape: f32[4,1], index: 7, kind: input, shape index: {}]   ;;  %s1811_s8 = inlined_call_operand.vmem [shape: f32[2,16,256], index: 8, kind: output, shape index: {}]  }
   0x1 LB: > { %s1329_s28 = sadd.s32 4294967295, %s1460_s27   ;;  %p1333_p0 = scmp.ge.s32.totalorder %s1460_s27, 1  ;;  %s1460_s27 = sphi %s1515_s27, %s18_s27  }
   0x2   : > { %p262_p1 = scmp.lt.s32.totalorder %s1460_s27, 3 }
   0x4   : > { %p263_p2 = pnand %p1333_p0, %p262_p1 }
   0x5   : > { %p296_p3 = scmp.lt.s32.totalorder (!%p263_p2), %s1329_s28, 1  ;;  %v1462_v0 = vmov (!%p263_p2), 0.0   ;;  %s1463_s29 = smov (!%p263_p2), 112   ;;  %v1466_v11 = vmov (!%p263_p2), 0.0|0.0   ;;  %vm349_vm0 = vcmask (!%p263_p2), 916480   ;;  %vm376_vm1 = vcmask (!%p263_p2), 785408  }
   0x6   : > { %266 = sbr.rel (%p263_p2) target bundleno = 1510 (0x5e6), region = 52  ;;  %307 = vst [vmem:[#allocation2] sm:$0xff] (!%p263_p2), %v1462_v0  ;;  %309 = vst [vmem:[#allocation2 + $0x18] sm:$0xff] (!%p263_p2), %v1462_v0  ;;  %1385 = vrot.lane.b32.xlu1 (!%p263_p2), %v1462_v0, %s1463_s29  ;;  %s1464_s12 = smov (!%p263_p2), 96   ;;  %vm441_vm2 = vcmask (!%p263_p2), 138240   ;;  %v1469_v50 = vmov (!%p263_p2), 0  }
   0x7   : > { %s1465_s13 = smov (!%p263_p2), 17   ;;  %s1467_s14 = smov (!%p263_p2), 15   ;;  %490 = vmatprep.mubr.bf16.mxu0 (!%p263_p2), %v1469_v50  ;;  %618 = vmatprep.mubr.bf16.mxu1 (!%p263_p2), %v1469_v50  ;;  %vm570_vm3 = vcmask (!%p263_p2), 121856   ;;  %vm668_vm4 = vcmask (!%p263_p2), 130048   ;;  %vm454_vm5 = vcmask (!%p263_p2), 392192   ;;  %vm783_vm6 = vcmask (!%p263_p2), 1043456  }
   0x8   : > { %s1468_s15 = smov (!%p263_p2), 16   ;;  %1429 = vset.pattern.permute.xlu0 (!%p263_p2), %v1469_v50  ;;  %1450 = vset.pattern.permute.xlu1 (!%p263_p2), %v1469_v50  ;;  %vm814_vm7 = vcmask (!%p263_p2), 1045504   ;;  %vm810_vm8 = vcmask (!%p263_p2), 97280  }
   0xd   : > { %s1813_s28 = smov (!%p296_p3, %s1329_s28), 1 }
   0xe   : > { %s1367_s30 = sshll.u32 %s1813_s28, 5 }
   0xf   : > { %s300_s11 = scalar_lea.vmem %s1803_s0, %s1367_s30  ;;  %s1731_s24 = scalar_lea.vmem %s1811_s8, %s1367_s30 }
  0x10   : > { %v314_v1 = vld [vmem:[%s300_s11] sm:$0xff]  ;;  %v315_v2 = vld [vmem:[%s300_s11 + $0x8] sm:$0xff]  ;;  %v316_v3 = vld [vmem:[%s300_s11 + $0x10] sm:$0xff] }
  0x11   : > { %318 = vst [vmem:[#allocation2 + $0x8] sm:$0xff] %v314_v1  ;;  %319 = vst [vmem:[#allocation2 + $0x10] sm:$0xff] %v315_v2  ;;  %v1389_v4 = vpack.i.bf16 %v315_v2, %v314_v1  ;;  %v317_v5 = vld [vmem:[%s300_s11 + $0x18] sm:$0xff]  ;;  %v1404_v8 = vpack.i.bf16 %v316_v3, %v1462_v0  ;;  %v388_v9 = vpack.c.bf16 %v316_v3, %v314_v1 }
  0x12   : > { %v1394_v6 = vpack.i.bf16 %v317_v5, %v316_v3  ;;  %v1409_v7 = vpack.i.bf16 %v1462_v0, %v317_v5  ;;  %v389_v10 = vpack.c.bf16 %v317_v5, %v315_v2 }
  0x13   : > { %1390 = vrot.lane.b32.xlu0 %v1389_v4, %s1463_s29  ;;  %1400 = vrot.lane.b32.xlu1 %v1389_v4, %s1464_s12 }
  0x17   : > { %1395 = vrot.lane.b32.xlu0 %v1394_v6, %s1463_s29  ;;  %1410 = vrot.lane.b32.xlu1 %v1409_v7, %s1464_s12 }
  0x1b   : > { %1405 = vrot.lane.b32.xlu0 %v1404_v8, %s1464_s12  ;;  %1420 = vrot.lane.b32.xlu1 %v1404_v8, %s1463_s29 }
  0x1f   : > { %1415 = vrot.lane.b32.xlu0 %v1389_v4, %s1463_s29  ;;  %425 = vrot.lane.b32.xlu1 %v388_v9, %s1465_s13 }
  0x23   : > { %1425 = vrot.lane.b32.xlu0 %v1409_v7, %s1463_s29  ;;  %423 = vrot.lane.b32.xlu1 %v1466_v11, %s1465_s13 }
  0x27   : > { %427 = vrot.lane.b32.xlu0 %v389_v10, %s1465_s13  ;;  %556 = vrot.lane.b32.xlu1 %v389_v10, %s1467_s14 }
  0x2b   : > { %554 = vrot.lane.b32.xlu0 %v388_v9, %s1467_s14  ;;  %654 = vrot.lane.b32.xlu1 %v389_v10, %s1468_s15 }
  0x2f   : > { %652 = vrot.lane.b32.xlu0 %v388_v9, %s1468_s15  ;;  %650 = vrot.lane.b32.xlu1 %v1466_v11, %s1468_s15  ;;  %v732_v9 = vld [vmem:[%s1806_s3 + $0x8] sm:$0xf] }
  0x33   : > { %552 = vrot.lane.b32.xlu0 %v1466_v11, %s1467_s14 }
  0x78   : > { %v1386_v12 = vpop.permute.xlu1 %1385 }
  0x79   : > { %v1388_v35 = vunpack.i.h.bf16 %v1386_v12  ;;  %v1387_v36 = vunpack.i.l.bf16 %v1386_v12 }
  0x85   : > { %v1391_v13 = vpop.permute.xlu0 %1390  ;;  %v1401_v14 = vpop.permute.xlu1 %1400 }
  0x86   : > { %v1393_v17 = vunpack.i.h.bf16 %v1391_v13  ;;  %v1402_v22 = vunpack.i.l.bf16 %v1401_v14  ;;  %v1392_v30 = vunpack.i.l.bf16 %v1391_v13  ;;  %v1403_v37 = vunpack.i.h.bf16 %v1401_v14 }
  0x88   : > { %v350_v39 = vsel %vm349_vm0, %v1392_v30, %v1393_v17  ;;  %v404_v54 = vsel %vm349_vm0, %v1387_v36, %v1392_v30  ;;  %v377_v55 = vsel %vm376_vm1, %v1402_v22, %v1403_v37 }
  0x89   : > { %v1396_v15 = vpop.permute.xlu0 %1395  ;;  %v1411_v16 = vpop.permute.xlu1 %1410 }
  0x8a   : > { %v1398_v18 = vunpack.i.h.bf16 %v1396_v15  ;;  %v1397_v26 = vunpack.i.l.bf16 %v1396_v15  ;;  %v1412_v32 = vunpack.i.l.bf16 %v1411_v16  ;;  %v1413_v38 = vunpack.i.h.bf16 %v1411_v16 }
  0x8c   : > { %v392_v19 = vpack.c.bf16 %v1398_v18, %v1393_v17  ;;  %v351_v34 = vsel %vm349_vm0, %v1397_v26, %v1398_v18  ;;  %v390_v40 = vpack.c.bf16 %v1397_v26, %v1392_v30  ;;  %v405_v44 = vsel %vm349_vm0, %v1388_v35, %v1397_v26  ;;  %v1451_v26 = vld [vmem:[%s1805_s2] sm:$0x3f]  }
  0x8d   : > { %v1406_v20 = vpop.permute.xlu0 %1405  ;;  %v1549_v21 = vpop.permute.xlu1 %1420  ;;  %v391_v43 = vpack.c.bf16 %v351_v34, %v350_v39  ;;  %v408_v56 = vpack.c.bf16 %v405_v44, %v404_v54  ;;  %v380_v59 = vsel %vm376_vm1, %v1412_v32, %v1413_v38 }
  0x8e   : > { %v1408_v23 = vunpack.i.h.bf16 %v1406_v20  ;;  %433 = vrot.lane.b32.xlu1 %v392_v19, %s1465_s13  ;;  %v1423_v25 = vunpack.i.h.bf16 %v1549_v21  ;;  %v1407_v42 = vunpack.i.l.bf16 %v1406_v20  ;;  %v1422_v52 = vunpack.i.l.bf16 %v1549_v21 }
  0x90   : > { %v1552_v24 = vpack.c.bf16 %v1408_v23, %v1402_v22  ;;  %v379_v47 = vsel %vm376_vm1, %v1408_v23, %v1412_v32  ;;  %v378_v58 = vsel %vm376_vm1, %v1403_v37, %v1407_v42 }
  0x91   : > { %v1555_v27 = vpop.permute.xlu0 %1415  ;;  %v426_v28 = vpop.permute.xlu1 %425  ;;  %v394_v57 = vpack.c.bf16 %v379_v47, %v377_v55  ;;  %v395_v1 = vpack.c.bf16 %v380_v59, %v378_v58  ;;  %v1632_v47 = vld [vmem:[#allocation2] sm:$0xf] }
  0x92   : > { %v1417_v29 = vunpack.i.l.bf16 %v1555_v27  ;;  %435 = vrot.lane.b32.xlu1 %v1552_v24, %s1465_s13  ;;  %v1418_v53 = vunpack.i.h.bf16 %v1555_v27 }
  0x94   : > { %v541_v31 = vpack.c.bf16 %v1423_v25, %v1417_v29  ;;  %v532_v0 = vsel %vm349_vm0, %v1418_v53, %v1422_v52  ;;  %v531_v5 = vsel %vm349_vm0, %v1417_v29, %v1418_v53 }
  0x95   : > { %v1426_v33 = vpop.permute.xlu0 %1425  ;;  %v424_v41 = vpop.permute.xlu1 %423 }
  0x96   : > { %558 = vrot.lane.b32.xlu0 %v541_v31, %s1467_s14  ;;  %660 = vrot.lane.b32.xlu1 %v392_v19, %s1468_s15  ;;  %v1428_v45 = vunpack.i.h.bf16 %v1426_v33  ;;  %v1427_v46 = vunpack.i.l.bf16 %v1426_v33  ;;  %v442_v49 = vsel %vm441_vm2, %v424_v41, %v426_v28 }
  0x98   : > { %v534_v60 = vsel %vm349_vm0, %v1427_v46, %v1428_v45  ;;  %v533_v3 = vsel %vm349_vm0, %v1423_v25, %v1427_v46  ;;  %v1453_v46 = vld [vmem:[%s1805_s2 + $0x10] sm:$0x3f]  }
  0x99   : > { %v428_v48 = vpop.permute.xlu0 %427  ;;  %v557_v62 = vpop.permute.xlu1 %556  ;;  %v543_v2 = vpack.c.bf16 %v534_v60, %v532_v0  ;;  %v542_v6 = vpack.c.bf16 %v533_v3, %v531_v5 }
  0x9a   : > { %431 = vrot.lane.b32.xlu0 %v391_v43, %s1465_s13  ;;  %656 = vrot.lane.b32.xlu1 %v390_v40, %s1468_s15  ;;  %v443_v51 = vsel %vm441_vm2, %v426_v28, %v428_v48  ;;  %v792_v48 = vrot.slane %v1632_v47, 4 }
  0x9b   : > { %458 = vmatprep.subr.bf16.mxu0 %v443_v51 }
  0x9c   : > { %459 = vmatpush1.bf16.msra.mxu0 %v442_v49  ;;  %v502_v49 = vlaneseq }
  0x9d   : > { %v555_v61 = vpop.permute.xlu0 %554  ;;  %v655_v10 = vpop.permute.xlu1 %654 }
  0x9e   : > { %429 = vrot.lane.b32.xlu0 %v408_v56, %s1465_s13  ;;  %437 = vrot.lane.b32.xlu1 %v394_v57, %s1465_s13  ;;  %v572_v63 = vsel %vm570_vm3, %v555_v61, %v557_v62  ;;  %v503_v54 = vshrl.u32 %v502_v49, 7 }
  0x9f   : > { %586 = vmatprep.subr.bf16.mxu1 %v572_v63 }
  0xa0   : > { %v504_v56 = vsub.s32 0, %v503_v54  ;;  %v508_v58 = vsub.s32 1, %v503_v54 }
  0xa1   : > { %v653_v4 = vpop.permute.xlu0 %652  ;;  %v651_v11 = vpop.permute.xlu1 %650 }
  0xa2   : > { %439 = vrot.lane.b32.xlu0 %v395_v1, %s1465_s13  ;;  %562 = vrot.lane.b32.xlu1 %v543_v2, %s1467_s14  ;;  %v670_v27 = vsel %vm668_vm4, %v653_v4, %v655_v10  ;;  %v669_v32 = vsel %vm668_vm4, %v651_v11, %v653_v4 }
  0xa5   : > { %v553_v7 = vpop.permute.xlu0 %552 }
  0xa6   : > { %560 = vrot.lane.b32.xlu0 %v542_v6, %s1467_s14  ;;  %568 = vrot.lane.b32.xlu1 %v395_v1, %s1467_s14  ;;  %v571_v8 = vsel %vm570_vm3, %v553_v7, %v555_v61  ;;  %v1338_v61 = vld [vmem:[%s1804_s1 + $0x2] sm:$0x3] }
  0xa7   : > { %587 = vmatpush1.bf16.msra.mxu1 %v571_v8  ;;  %v1651_v5 = vrot.slane %v1338_v61, %v508_v58 }
  0xaa   : > { %658 = vrot.lane.b32.xlu0 %v391_v43, %s1468_s15  ;;  %666 = vrot.lane.b32.xlu1 %v395_v1, %s1468_s15  ;;  %v1452_v43 = vld [vmem:[%s1805_s2 + $0x8] sm:$0x3f]   ;;  %v1648_v1 = vrot.slane %v1338_v61, %v504_v56 }
  0xae   : > { %566 = vrot.lane.b32.xlu0 %v394_v57, %s1467_s14  ;;  %662 = vrot.lane.b32.xlu1 %v1552_v24, %s1468_s15 }
  0xb2   : > { %664 = vrot.lane.b32.xlu0 %v394_v57, %s1468_s15  ;;  %793 = vrot.lane.b32.xlu1 %v792_v48, %s1463_s29  ;;  %v311_v57 = vld [vmem:[%s1804_s1] sm:$0x3] }
  0xb3   : > { %v1639_v59 = vrot.slane %v311_v57, %v504_v56  ;;  %v1641_v60 = vrot.slane %v311_v57, %v508_v58 }
  0xb6   : > { %564 = vrot.lane.b32.xlu0 %v1552_v24, %s1467_s14 }
  0xba   : > { %740 = vperm.xlu0 %1429, %v732_v9  }
 0x100   : > { %v434_v12 = vpop.permute.xlu1 %433 }
 0x104   : > { %v436_v13 = vpop.permute.xlu1 %435 }
 0x108   : > { %v559_v14 = vpop.permute.xlu0 %558  ;;  %v661_v15 = vpop.permute.xlu1 %660 }
 0x10c   : > { %v432_v16 = vpop.permute.xlu0 %431  ;;  %v657_v17 = vpop.permute.xlu1 %656 }
 0x10d   : > { %v445_v18 = vsel %vm441_vm2, %v432_v16, %v434_v12 }
 0x10e   : > { %460 = vmatprep.subr.bf16.mxu0 %v445_v18 }
 0x110   : > { %v430_v19 = vpop.permute.xlu0 %429  ;;  %v438_v20 = vpop.permute.xlu1 %437 }
 0x111   : > { %v444_v21 = vsel %vm441_vm2, %v430_v19, %v432_v16  ;;  %v446_v25 = vsel %vm441_vm2, %v436_v13, %v438_v20 }
 0x112   : > { %461 = vmatpush1.bf16.msra.mxu0 %v444_v21 }
 0x114   : > { %v440_v22 = vpop.permute.xlu0 %439  ;;  %v563_v23 = vpop.permute.xlu1 %562 }
 0x115   : > { %v447_v24 = vsel %vm441_vm2, %v438_v20, %v440_v22 }
 0x116   : > { %462 = vmatprep.subr.bf16.mxu0 %v447_v24 }
 0x117   : > { %463 = vmatpush1.bf16.msra.mxu0 %v446_v25 }
 0x118   : > { %v561_v28 = vpop.permute.xlu0 %560  ;;  %684 = vmatprep.subr.bf16.mxu0 %v670_v27  ;;  %v569_v29 = vpop.permute.xlu1 %568 }
 0x119   : > { %v574_v30 = vsel %vm570_vm3, %v561_v28, %v563_v23  ;;  %v573_v31 = vsel %vm570_vm3, %v559_v14, %v561_v28 }
 0x11a   : > { %588 = vmatprep.subr.bf16.mxu1 %v574_v30  ;;  %1342 = vmatmul.mubr.msk.bf16.vlgmr.msra.gmra.mrb[0].mxu0 %vm454_vm5, %v1451_v26 }
 0x11b   : > { %589 = vmatpush1.bf16.msra.mxu1 %v573_v31  ;;  %685 = vmatpush1.bf16.msra.mxu0 %v669_v32  ;;  %v758_v32 = vld [vmem:[#allocation2 + $0x18] sm:$0xf] }
 0x11c   : > { %v659_v33 = vpop.permute.xlu0 %658  ;;  %716 = vmatprep.mubr.bf16.mxu0 %v1469_v50  ;;  %v667_v36 = vpop.permute.xlu1 %666 }
 0x11d   : > { %v671_v34 = vsel %vm668_vm4, %v657_v17, %v659_v33  ;;  %v672_v35 = vsel %vm668_vm4, %v659_v33, %v661_v15 }
 0x11e   : > { %686 = vmatprep.subr.bf16.mxu0 %v672_v35 }
 0x11f   : > { %687 = vmatpush1.bf16.msra.mxu0 %v671_v34 }
 0x120   : > { %v567_v37 = vpop.permute.xlu0 %566  ;;  %v663_v39 = vpop.permute.xlu1 %662 }
 0x121   : > { %v576_v38 = vsel %vm570_vm3, %v567_v37, %v569_v29 }
 0x122   : > { %590 = vmatprep.subr.bf16.mxu1 %v576_v38 }
 0x124   : > { %v665_v40 = vpop.permute.xlu0 %664 }
 0x125   : > { %v673_v41 = vsel %vm668_vm4, %v663_v39, %v665_v40  ;;  %v674_v42 = vsel %vm668_vm4, %v665_v40, %v667_v36  ;;  %v866_v36 = vrot.slane %v758_v32, 4 }
 0x126   : > { %688 = vmatprep.subr.bf16.mxu0 %v674_v42 }
 0x127   : > { %689 = vmatpush1.bf16.msra.mxu0 %v673_v41 }
 0x128   : > { %v565_v44 = vpop.permute.xlu0 %564 }
 0x129   : > { %v575_v45 = vsel %vm570_vm3, %v565_v44, %v567_v37  ;;  %v794_v37 = vpop.permute.xlu1 %793 }
 0x12a   : > { %591 = vmatpush1.bf16.msra.mxu1 %v575_v45  ;;  %1348 = vmatmul.mubr.msk.bf16.vlgmr.msra.gmra.mrb[4].mxu0 %vm454_vm5, %v1452_v43 }
 0x12b   : > { %984 = vmatprep.mubr.bf16.mxu0 %v1469_v50 }
 0x12d   : > { %1346 = vmatmul.mubr.msk.bf16.vlgmr.msra.gmra.mrb[0].mxu1 %vm454_vm5, %v1453_v46 }
 0x12e   : > { %853 = vmatprep.mubr.bf16.mxu1 %v1469_v50 }
 0x139   : > { %v741_v21 = vpop.permute.xlu0 %740 }
 0x1ed   : > { %v492_v51 = vpop.f32.mrb[0].mxu0 }
 0x1ee   : > { %v494_v52 = vpop.f32.mrb[1].mxu0  ;;  %v512_v62 = vmul.f32 %v1639_v59, %v492_v51 }
 0x1ef   : > { %v496_v53 = vpop.f32.mrb[2].mxu0  ;;  %v513_v63 = vmul.f32 %v1641_v60, %v494_v52 }
 0x1f0   : > { %v498_v55 = vpop.f32.mrb[3].mxu0  ;;  %v514_v2 = vmul.f32 %v1639_v59, %v496_v53 }
 0x1f1   : > { %v515_v6 = vmul.f32 %v1641_v60, %v498_v55 }
 0x1fd   : > { %v718_v0 = vpop.f32.mrb[4].mxu0 }
 0x1fe   : > { %v719_v3 = vadd.f32 %v718_v0, %v512_v62  ;;  %v720_v4 = vpop.f32.mrb[5].mxu0  ;;  %v995_v0 = vld [vmem:[%s1808_s5] sm:$0xff] }
 0x1ff   : > { %v721_v7 = vadd.f32 %v720_v4, %v513_v63  ;;  %v722_v8 = vpop.f32.mrb[6].mxu0 }
 0x200   : > { %v723_v9 = vadd.f32 %v722_v8, %v514_v2  ;;  %v620_v10 = vpop.f32.mrb[0].mxu1  ;;  %v724_v11 = vpop.f32.mrb[7].mxu0 }
 0x201   : > { %v640_v12 = vmul.f32 %v1648_v1, %v620_v10  ;;  %v725_v13 = vadd.f32 %v724_v11, %v515_v6  ;;  %v622_v14 = vpop.f32.mrb[1].mxu1 }
 0x202   : > { %v641_v15 = vmul.f32 %v1651_v5, %v622_v14  ;;  %v624_v16 = vpop.f32.mrb[2].mxu1 }
 0x203   : > { %v642_v17 = vmul.f32 %v1648_v1, %v624_v16  ;;  %v626_v18 = vpop.f32.mrb[3].mxu1  ;;  %v1657_v19 = vadd.f32 %v719_v3, %v640_v12  ;;  %v790_v12 = vld [vmem:[%s1807_s4] sm:$0xf] }
 0x204   : > { %v643_v20 = vmul.f32 %v1651_v5, %v626_v18  ;;  %v1660_v22 = vadd.f32 %v721_v7, %v641_v15 }
 0x205   : > { %v729_v23 = vadd.f32 %v723_v9, %v642_v17 }
 0x206   : > { %v730_v24 = vadd.f32 %v725_v13, %v643_v20 }
 0x207   : > { %v745_v25 = vadd.f32 %v741_v21, %v729_v23 }
 0x208   : > { %v746_v26 = vadd.f32 %v741_v21, %v730_v24  ;;  %v1352_v24 = vld [vmem:[%s1807_s4 + $0x8] sm:$0xf] }
 0x209   : > { %v749_v27 = vmax.f32 %v745_v25, 0.0  ;;  %v1349_v25 = vld [vmem:[%s1807_s4 + $0x4] sm:$0xf] }
 0x20a   : > { %v750_v28 = vmax.f32 %v746_v26, 0.0  ;;  %v1717_v26 = vld [vmem:[#allocation2] sm:$0xf] }
 0x20b   : > { %751 = vst [vmem:[#allocation2 + $0x8] sm:$0xf] %v749_v27  ;;  %v1051_v27 = vrot.slane %v1717_v26, 4 }
 0x20c   : > { %752 = vst [vmem:[#allocation2 + $0x10] sm:$0xf] %v750_v28  ;;  %v1018_v28 = vld [vmem:[#allocation2 + $0x18] sm:$0xf] }
 0x212   : > { %v756_v29 = vld [vmem:[#allocation2 + $0x8] sm:$0xf] }
 0x213   : > { %v757_v30 = vld [vmem:[#allocation2 + $0x10] sm:$0xf]  ;;  %v761_v31 = vrot.slane %v756_v29, 4 }
 0x214   : > { %v1430_v33 = vpack.i.bf16 %v757_v30, %v756_v29  ;;  %v762_v34 = vrot.slane %v757_v30, 4 }
 0x216   : > { %1431 = vrot.lane.b32.xlu0 %v1430_v33, %s1464_s12  ;;  %v1435_v35 = vpack.i.bf16 %v762_v34, %v761_v31 }
 0x218   : > { %1436 = vrot.lane.b32.xlu1 %v1435_v35, %s1463_s29 }
 0x21a   : > { %867 = vrot.lane.b32.xlu0 %v866_v36, %s1463_s29 }
 0x21c   : > { %776 = vrot.lane.b32.xlu1 %v758_v32, %s1464_s12 }
 0x288   : > { %v1432_v38 = vpop.permute.xlu0 %1431 }
 0x289   : > { %v1433_v42 = vunpack.i.l.bf16 %v1432_v38  ;;  %v1434_v45 = vunpack.i.h.bf16 %v1432_v38 }
 0x28a   : > { %v1437_v39 = vpop.permute.xlu1 %1436 }
 0x28b   : > { %v1439_v40 = vunpack.i.h.bf16 %v1437_v39  ;;  %v1438_v41 = vunpack.i.l.bf16 %v1437_v39  ;;  %v778_v55 = vsel %vm376_vm1, %v1433_v42, %v1434_v45 }
 0x28c   : > { %v868_v46 = vpop.permute.xlu0 %867 }
 0x28d   : > { %v767_v43 = vsel %vm349_vm0, %v1438_v41, %v1439_v40  ;;  %v795_v44 = vsel %vm349_vm0, %v794_v37, %v1438_v41  ;;  %v784_v48 = vsel %vm783_vm6, %v1632_v47, %v1438_v41  ;;  %v869_v53 = vsel %vm349_vm0, %v1439_v40, %v868_v46 }
 0x28e   : > { %v787_v49 = vpack.c.bf16 %v1433_v42, %v784_v48  ;;  %v797_v51 = vsel %vm783_vm6, %v1632_v47, %v795_v44  ;;  %v785_v52 = vsel %vm783_vm6, %v756_v29, %v767_v43  ;;  %v777_v54 = vpop.permute.xlu1 %776  ;;  %v871_v61 = vsel %vm783_vm6, %v757_v30, %v869_v53 }
 0x28f   : > { %v798_v56 = vpack.c.bf16 %v1433_v42, %v797_v51  ;;  %v788_v57 = vpack.c.bf16 %v778_v55, %v785_v52  ;;  %v779_v58 = vsel %vm376_vm1, %v1434_v45, %v777_v54  ;;  %v786_v47 = vsel %vm783_vm6, %v757_v30, %v1439_v40 }
 0x290   : > { %935 = vrot.lane.b32.xlu1 %v787_v49, %s1468_s15  ;;  %875 = vrot.lane.b32.xlu0 %v787_v49, %s1467_s14  ;;  %v789_v62 = vpack.c.bf16 %v779_v58, %v786_v47  ;;  %v872_v63 = vpack.c.bf16 %v779_v58, %v871_v61 }
 0x294   : > { %802 = vrot.lane.b32.xlu1 %v798_v56, %s1465_s13  ;;  %804 = vrot.lane.b32.xlu0 %v788_v57, %s1465_s13 }
 0x298   : > { %806 = vrot.lane.b32.xlu1 %v789_v62, %s1465_s13  ;;  %879 = vrot.lane.b32.xlu0 %v872_v63, %s1467_s14 }
 0x29c   : > { %877 = vrot.lane.b32.xlu1 %v788_v57, %s1467_s14  ;;  %937 = vrot.lane.b32.xlu0 %v788_v57, %s1468_s15 }
 0x2a0   : > { %939 = vrot.lane.b32.xlu1 %v789_v62, %s1468_s15  ;;  %998 = vperm.xlu0 %1429, %v995_v0  }
 0x2a4   : > { %1052 = vrot.lane.b32.xlu0 %v1051_v27, %s1463_s29 }
 0x2a8   : > { %1036 = vrot.lane.b32.xlu0 %v1018_v28, %s1464_s12 }
 0x302   : > { %v936_v2 = vpop.permute.xlu1 %935  ;;  %v876_v3 = vpop.permute.xlu0 %875 }
 0x306   : > { %v803_v4 = vpop.permute.xlu1 %802  ;;  %v805_v6 = vpop.permute.xlu0 %804 }
 0x307   : > { %v808_v7 = vsel %vm441_vm2, %v803_v4, %v805_v6 }
 0x308   : > { %v816_v11 = vsel %vm814_vm7, %v808_v7, 0 }
 0x30a   : > { %v807_v8 = vpop.permute.xlu1 %806  ;;  %v880_v9 = vpop.permute.xlu0 %879 }
 0x30b   : > { %v809_v10 = vsel %vm441_vm2, %v805_v6, %v807_v8 }
 0x30c   : > { %1350 = vmatprep.subr.msk.bf16.mxu1 %vm814_vm7, %v809_v10 }
 0x30d   : > { %822 = vmatpush1.bf16.msra.mxu1 %v816_v11 }
 0x30e   : > { %v878_v13 = vpop.permute.xlu1 %877  ;;  %v938_v14 = vpop.permute.xlu0 %937 }
 0x30f   : > { %v881_v15 = vsel %vm570_vm3, %v876_v3, %v878_v13  ;;  %v882_v16 = vsel %vm570_vm3, %v878_v13, %v880_v9  ;;  %v941_v18 = vsel %vm668_vm4, %v936_v2, %v938_v14  ;;  %v1123_v2 = vrot.slane %v1018_v28, 4 }
 0x310   : > { %v887_v17 = vsel %vm814_vm7, %v881_v15, 0  ;;  %1351 = vmatmul.mubr.msk.bf16.vlgmr.msra.gmra.mrb[4].mxu1 %vm810_vm8, %v790_v12  ;;  %1353 = vmatprep.subr.msk.bf16.mxu1 %vm814_vm7, %v882_v16  ;;  %v947_v23 = vsel %vm814_vm7, %v941_v18, 0 }
 0x311   : > { %893 = vmatpush1.bf16.msra.mxu1 %v887_v17  ;;  %924 = vmatprep.mubr.bf16.mxu1 %v1469_v50 }
 0x312   : > { %v940_v20 = vpop.permute.xlu1 %939 }
 0x313   : > { %v942_v21 = vsel %vm668_vm4, %v938_v14, %v940_v20 }
 0x314   : > { %1355 = vmatprep.subr.msk.bf16.mxu0 %vm814_vm7, %v942_v21 }
 0x315   : > { %953 = vmatpush1.bf16.msra.mxu0 %v947_v23 }
 0x318   : > { %1354 = vmatmul.mubr.msk.bf16.vlgmr.msra.gmra.mrb[8].mxu1 %vm810_vm8, %v1352_v24  ;;  %1356 = vmatmul.mubr.msk.bf16.vlgmr.msra.gmra.mrb[8].mxu0 %vm810_vm8, %v1349_v25 }
 0x319   : > { %1110 = vmatprep.mubr.bf16.mxu1 %v1469_v50  ;;  %1181 = vmatprep.mubr.bf16.mxu0 %v1469_v50 }
 0x31f   : > { %v999_v49 = vpop.permute.xlu0 %998 }
 0x323   : > { %v1053_v7 = vpop.permute.xlu0 %1052 }
 0x327   : > { %v1037_v17 = vpop.permute.xlu0 %1036 }
 0x3e3   : > { %v855_v29 = vpop.f32.mrb[4].mxu1 }
 0x3e4   : > { %v857_v30 = vpop.f32.mrb[5].mxu1  ;;  %v862_v33 = vmul.f32 %v855_v29, %v1639_v59 }
 0x3e5   : > { %v859_v31 = vpop.f32.mrb[6].mxu1  ;;  %v863_v34 = vmul.f32 %v857_v30, %v1641_v60 }
 0x3e6   : > { %v860_v32 = vpop.f32.mrb[7].mxu1  ;;  %v1252_v31 = vld [vmem:[%s1810_s7] sm:$0xf] }
 0x3eb   : > { %v926_v35 = vpop.f32.mrb[8].mxu1  ;;  %v986_v36 = vpop.f32.mrb[8].mxu0 }
 0x3ec   : > { %v933_v37 = vmul.f32 %v926_v35, %v1648_v1  ;;  %v987_v38 = vadd.f32 %v986_v36, %v862_v33  ;;  %v928_v39 = vpop.f32.mrb[9].mxu1  ;;  %v988_v40 = vpop.f32.mrb[9].mxu0 }
 0x3ed   : > { %v934_v41 = vmul.f32 %v928_v39, %v1651_v5  ;;  %v989_v42 = vadd.f32 %v988_v40, %v863_v34  ;;  %v930_v43 = vpop.f32.mrb[10].mxu1  ;;  %v990_v44 = vpop.f32.mrb[10].mxu0 }
 0x3ee   : > { %v993_v45 = vadd.f32 %v987_v38, %v933_v37  ;;  %v931_v46 = vpop.f32.mrb[11].mxu1  ;;  %v991_v48 = vpop.f32.mrb[11].mxu0 }
 0x3ef   : > { %v994_v51 = vadd.f32 %v989_v42, %v934_v41  ;;  %v1049_v41 = vld [vmem:[%s1809_s6] sm:$0x3] }
 0x3f0   : > { %v1001_v52 = vadd.f32 %v999_v49, %v993_v45 }
 0x3f1   : > { %v1002_v53 = vadd.f32 %v999_v49, %v994_v51  ;;  %v1360_v49 = vld [vmem:[%s1809_s6 + $0x4] sm:$0x3] }
 0x3f2   : > { %v1003_v54 = vmax.f32 %v1001_v52, 0.0 }
 0x3f3   : > { %v1004_v55 = vmax.f32 %v1002_v53, 0.0 }
 0x3f4   : > { %v1007_v56 = vrot.slane %v1003_v54, 4  ;;  %1264 = vst [vmem:[%s1731_s24 + $0x10] sm:$0xf] %v1003_v54  ;;  %v1357_v54 = vld [vmem:[%s1809_s6 + $0x2] sm:$0x3] }
 0x3f5   : > { %v1008_v57 = vrot.slane %v1004_v55, 4  ;;  %1265 = vst [vmem:[%s1731_s24 + $0x18] sm:$0xf] %v1004_v55 }
 0x3f6   : > { %1011 = vst [vmem:[#allocation2 + $0x8] sm:$0xf] %v1007_v56 }
 0x3f7   : > { %1012 = vst [vmem:[#allocation2 + $0x10] sm:$0xf] %v1008_v57 }
 0x3fd   : > { %v1016_v58 = vld [vmem:[#allocation2 + $0x8] sm:$0xf] }
 0x3fe   : > { %v1017_v61 = vld [vmem:[#allocation2 + $0x10] sm:$0xf]  ;;  %v1021_v47 = vrot.slane %v1016_v58, 4 }
 0x3ff   : > { %v1022_v62 = vrot.slane %v1017_v61, 4  ;;  %v1445_v0 = vpack.i.bf16 %v1017_v61, %v1016_v58 }
 0x401   : > { %v1440_v63 = vpack.i.bf16 %v1022_v62, %v1021_v47 }
 0x403   : > { %1441 = vrot.lane.b32.xlu1 %v1440_v63, %s1463_s29 }
 0x407   : > { %1446 = vrot.lane.b32.xlu1 %v1445_v0, %s1464_s12 }
 0x40b   : > { %1124 = vrot.lane.b32.xlu1 %v1123_v2, %s1463_s29 }
 0x475   : > { %v1442_v3 = vpop.permute.xlu1 %1441 }
 0x476   : > { %v1443_v4 = vunpack.i.l.bf16 %v1442_v3  ;;  %v1444_v6 = vunpack.i.h.bf16 %v1442_v3 }
 0x478   : > { %v1043_v11 = vsel %vm783_vm6, %v1717_v26, %v1443_v4  ;;  %v1027_v12 = vsel %vm349_vm0, %v1443_v4, %v1444_v6  ;;  %v1054_v13 = vsel %vm349_vm0, %v1053_v7, %v1443_v4  ;;  %v1045_v28 = vsel %vm783_vm6, %v1017_v61, %v1444_v6 }
 0x479   : > { %v1447_v8 = vpop.permute.xlu1 %1446  ;;  %v1056_v20 = vsel %vm783_vm6, %v1717_v26, %v1054_v13  ;;  %v1044_v21 = vsel %vm783_vm6, %v1016_v58, %v1027_v12  ;;  %v731_v26 = vld [vmem:[%s1806_s3] sm:$0xff] }
 0x47a   : > { %v1449_v9 = vunpack.i.h.bf16 %v1447_v8  ;;  %v1448_v10 = vunpack.i.l.bf16 %v1447_v8 }
 0x47c   : > { %v1046_v14 = vpack.c.bf16 %v1448_v10, %v1043_v11  ;;  %v1038_v16 = vsel %vm376_vm1, %v1448_v10, %v1449_v9  ;;  %v1057_v24 = vpack.c.bf16 %v1448_v10, %v1056_v20  ;;  %v1039_v25 = vsel %vm376_vm1, %v1449_v9, %v1037_v17 }
 0x47d   : > { %v1125_v15 = vpop.permute.xlu1 %1124  ;;  %v1047_v23 = vpack.c.bf16 %v1038_v16, %v1044_v21  ;;  %v1048_v29 = vpack.c.bf16 %v1039_v25, %v1045_v28 }
 0x47e   : > { %v1126_v18 = vsel %vm349_vm0, %v1444_v6, %v1125_v15  ;;  %1192 = vrot.lane.b32.xlu0 %v1046_v14, %s1468_s15  ;;  %1132 = vrot.lane.b32.xlu1 %v1046_v14, %s1467_s14 }
 0x47f   : > { %v1128_v27 = vsel %vm783_vm6, %v1017_v61, %v1126_v18 }
 0x480   : > { %v1129_v30 = vpack.c.bf16 %v1039_v25, %v1128_v27 }
 0x482   : > { %1063 = vrot.lane.b32.xlu1 %v1047_v23, %s1465_s13  ;;  %1061 = vrot.lane.b32.xlu0 %v1057_v24, %s1465_s13 }
 0x486   : > { %1136 = vrot.lane.b32.xlu1 %v1129_v30, %s1467_s14  ;;  %1065 = vrot.lane.b32.xlu0 %v1048_v29, %s1465_s13 }
 0x48a   : > { %1194 = vrot.lane.b32.xlu1 %v1047_v23, %s1468_s15  ;;  %1134 = vrot.lane.b32.xlu0 %v1047_v23, %s1467_s14 }
 0x48e   : > { %1196 = vrot.lane.b32.xlu0 %v1048_v29, %s1468_s15  ;;  %1255 = vperm.xlu1 %1450, %v1252_v31  }
 0x492   : > { %735 = vperm.xlu0 %1429, %v731_v26  }
 0x4f0   : > { %v1133_v32 = vpop.permute.xlu1 %1132  ;;  %v1193_v33 = vpop.permute.xlu0 %1192 }
 0x4f4   : > { %v1064_v34 = vpop.permute.xlu1 %1063  ;;  %v1062_v35 = vpop.permute.xlu0 %1061 }
 0x4f5   : > { %v1067_v36 = vsel %vm441_vm2, %v1062_v35, %v1064_v34 }
 0x4f6   : > { %v1073_v40 = vsel %vm814_vm7, %v1067_v36, 0 }
 0x4f8   : > { %v1137_v37 = vpop.permute.xlu1 %1136  ;;  %v1066_v38 = vpop.permute.xlu0 %1065 }
 0x4f9   : > { %v1068_v39 = vsel %vm441_vm2, %v1064_v34, %v1066_v38 }
 0x4fa   : > { %1358 = vmatprep.subr.msk.bf16.mxu1 %vm814_vm7, %v1068_v39 }
 0x4fb   : > { %1079 = vmatpush1.bf16.msra.mxu1 %v1073_v40 }
 0x4fc   : > { %v1195_v42 = vpop.permute.xlu1 %1194  ;;  %v1135_v43 = vpop.permute.xlu0 %1134 }
 0x4fd   : > { %v1138_v44 = vsel %vm570_vm3, %v1133_v32, %v1135_v43  ;;  %v1139_v45 = vsel %vm570_vm3, %v1135_v43, %v1137_v37  ;;  %v1198_v48 = vsel %vm668_vm4, %v1193_v33, %v1195_v42 }
 0x4fe   : > { %v1144_v46 = vsel %vm814_vm7, %v1138_v44, 0  ;;  %1359 = vmatmul.mubr.msk.bf16.vlgmr.msra.gmra.mrb[12].mxu1 %vm810_vm8, %v1049_v41  ;;  %1361 = vmatprep.subr.msk.bf16.mxu0 %vm814_vm7, %v1139_v45  ;;  %v1204_v53 = vsel %vm814_vm7, %v1198_v48, 0 }
 0x4ff   : > { %1150 = vmatpush1.bf16.msra.mxu0 %v1144_v46  ;;  %1241 = vmatprep.mubr.bf16.mxu1 %v1469_v50 }
 0x500   : > { %v1197_v51 = vpop.permute.xlu0 %1196 }
 0x501   : > { %v1199_v52 = vsel %vm668_vm4, %v1195_v42, %v1197_v51 }
 0x502   : > { %1363 = vmatprep.subr.msk.bf16.mxu1 %vm814_vm7, %v1199_v52  ;;  %1362 = vmatmul.mubr.msk.bf16.vlgmr.msra.gmra.mrb[12].mxu0 %vm810_vm8, %v1360_v49 }
 0x503   : > { %1210 = vmatpush1.bf16.msra.mxu1 %v1204_v53 }
 0x506   : > { %1364 = vmatmul.mubr.msk.bf16.vlgmr.msra.gmra.mrb[16].mxu1 %vm810_vm8, %v1357_v54 }
 0x50d   : > { %v1256_v12 = vpop.permute.xlu1 %1255 }
 0x511   : > { %v736_v50 = vpop.permute.xlu0 %735 }
 0x512   : > { %v743_v55 = vadd.f32 %v736_v50, %v1657_v19  ;;  %v744_v56 = vadd.f32 %v736_v50, %v1660_v22 }
 0x514   : > { %v747_v57 = vmax.f32 %v743_v55, 0.0  ;;  %v748_v58 = vmax.f32 %v744_v56, 0.0 }
 0x516   : > { %1262 = vst [vmem:[%s1731_s24] sm:$0xff] %v747_v57  ;;  %1263 = vst [vmem:[%s1731_s24 + $0x8] sm:$0xff] %v748_v58 }
 0x5d1   : > { %v1112_v61 = vpop.f32.mrb[12].mxu1 }
 0x5d2   : > { %v1114_v47 = vpop.f32.mrb[13].mxu1  ;;  %v1119_v4 = vmul.f32 %v1112_v61, %v1639_v59 }
 0x5d3   : > { %v1116_v62 = vpop.f32.mrb[14].mxu1  ;;  %v1120_v19 = vmul.f32 %v1114_v47, %v1641_v60 }
 0x5d4   : > { %v1117_v63 = vpop.f32.mrb[15].mxu1 }
 0x5d5   : > { %v1183_v0 = vpop.f32.mrb[12].mxu0 }
 0x5d6   : > { %v1185_v2 = vpop.f32.mrb[13].mxu0  ;;  %v1190_v6 = vmul.f32 %v1183_v0, %v1648_v1 }
 0x5d7   : > { %v1187_v3 = vpop.f32.mrb[14].mxu0  ;;  %v1191_v22 = vmul.f32 %v1185_v2, %v1651_v5 }
 0x5d8   : > { %v1188_v7 = vpop.f32.mrb[15].mxu0 }
 0x5d9   : > { %v1243_v8 = vpop.f32.mrb[16].mxu1 }
 0x5da   : > { %v1244_v9 = vadd.f32 %v1243_v8, %v1119_v4  ;;  %v1245_v10 = vpop.f32.mrb[17].mxu1 }
 0x5db   : > { %v1246_v11 = vadd.f32 %v1245_v10, %v1120_v19  ;;  %v1247_v13 = vpop.f32.mrb[18].mxu1 }
 0x5dc   : > { %v1250_v14 = vadd.f32 %v1244_v9, %v1190_v6  ;;  %v1248_v15 = vpop.f32.mrb[19].mxu1 }
 0x5dd   : > { %v1251_v16 = vadd.f32 %v1246_v11, %v1191_v22 }
 0x5de   : > { %v1258_v17 = vadd.f32 %v1256_v12, %v1250_v14 }
 0x5df   : > { %v1259_v59 = vadd.f32 %v1256_v12, %v1251_v16 }
 0x5e0   : > { %v1260_v18 = vmax.f32 %v1258_v17, 0.0 }
 0x5e1   : > { %v1261_v1 = vmax.f32 %v1259_v59, 0.0 }
 0x5e2   : > { %v1268_v20 = vrot.slane %v1260_v18, 4 }
 0x5e3   : > { %v1269_v21 = vrot.slane %v1261_v1, 4 }
 0x5e4   : > { %1272 = vst [vmem:[%s1731_s24 + $0x10] sm:$0xf0] %v1268_v20 }
 0x5e5   : > { %1273 = vst [vmem:[%s1731_s24 + $0x18] sm:$0xf0] %v1269_v21 }
 0x5e6 PF: > { %s18_s27 = sadd.s32 1, %s1460_s27  }
 0x5e7   : > { %p15_p4 = scmp.ge.s32.totalorder %s18_s27, 4  }
 0x5e9   :  { %17 = sbr.rel (!%p15_p4) target bundleno = 1 (0x1), region = 89 }

</bundles_post_ra>
